<compile_context>
chip_gen: v7x
topology: tpu7x:2x2x1
jax: 0.10.0
libtpu: 0.0.40
codegen_flags: <defaults>
</compile_context>

<pallas_src>
import functools

import jax
import jax.numpy as jnp
from jax.experimental import pallas as pl
from jax.experimental.pallas import tpu as pltpu


def _round_up(x: int, m: int) -> int:
    return ((x + m - 1) // m) * m


def _vi_kernel(bx, bw, bz, bhw, bhz, byw,
               z_ref, w_ref, y_ref, c_ref, lp_ref,
               wy_ref, by_ref, wc_ref, bc_ref,
               out_ref):
    # VMEM blocks (batch on sublane x lane):
    #   z (dz, R, 128), w (dw, R, 128), y/c (R, 128), lp (6, R, 128),
    #   out (3, R, 128) rows = [m, log_qyz, log_qc].
    # SMEM (whole arrays): wy (n_cls, dz+1), by (n_cls,), wc (1, dw+1), bc (1,).
    dz = z_ref.shape[0]
    dw = w_ref.shape[0]
    n_cls = wy_ref.shape[0]

    yv = y_ref[...]                                   # (R, 128)
    cv = c_ref[...]                                   # (R, 128)

    log_px = lp_ref[0]
    log_pw = lp_ref[1]
    log_pz = lp_ref[2]
    log_qw = lp_ref[3]
    log_qz = lp_ref[4]
    log_qyw = lp_ref[5]

    # Hoist all SMEM scalar reads out of the unrolled loops (no repeated
    # sld + vbroadcast inside the FMA chains).
    wy = [[wy_ref[i, k] for k in range(dz + 1)] for i in range(n_cls)]
    by = [by_ref[i] for i in range(n_cls)]
    wc = [wc_ref[0, k] for k in range(dw + 1)]
    bc0 = bc_ref[0]

    zcols = [z_ref[k] for k in range(dz)]             # each (R, 128)
    wcols = [w_ref[k] for k in range(dw)]

    # ---- aux_y(zc = [z, c]): Categorical logits over n_cls classes ----------
    # K = dz + 1 is tiny -> VPU broadcast FMAs with SMEM weights (skip MXU).
    logits_y = []
    for i in range(n_cls):
        acc = cv * wy[i][dz] + by[i]                  # c-column + bias
        for k in range(dz):
            acc = acc + zcols[k] * wy[i][k]
        logits_y.append(acc)                          # (R, 128)
    mx = logits_y[0]
    for i in range(1, n_cls):
        mx = jnp.maximum(mx, logits_y[i])
    se = jnp.exp(logits_y[0] - mx)
    for i in range(1, n_cls):
        se = se + jnp.exp(logits_y[i] - mx)
    lse = mx + jnp.log(se)
    chosen = jnp.zeros_like(mx)
    for i in range(n_cls):
        chosen = chosen + jnp.where(jnp.abs(yv - float(i)) < 0.5,
                                    logits_y[i], 0.0)
    log_qyz = chosen - lse                            # Categorical log_prob(y)

    # ---- aux_c(wy = [w, y]): Bernoulli head (single logit) -------------------
    logit_c = yv * wc[dw] + bc0
    for k in range(dw):
        logit_c = logit_c + wcols[k] * wc[k]
    softplus = jnp.maximum(logit_c, 0.0) + jnp.log1p(jnp.exp(-jnp.abs(logit_c)))
    log_qc = cv * logit_c - softplus                  # Bernoulli log_prob(c)

    # ---- fused loss term ------------------------------------------------------
    m1 = (-bx) * log_px + bw * (log_qw - log_pw) + bz * (log_qz - log_pz) \
        - byw * log_qyw
    m = m1 + bhz * log_qyz + bhw * log_qc

    out_ref[0] = m
    out_ref[1] = log_qyz
    out_ref[2] = log_qc


@functools.partial(jax.jit, static_argnames=("coeffs", "block_rows"))
def vi_adv_cond_info_forward(z, w, y, c,
                             log_px, log_pw, log_pz, log_qw, log_qz, log_qyw,
                             aux_y_w, aux_y_b, aux_c_w, aux_c_b,
                             *, coeffs, block_rows=32768):
    """Forward of VI_adv_cond_info given the model's reduced log-probs.

    coeffs = (bx, bw, bz, bhw, bhz, byw, byz, bc)  -- static Python floats.
    Returns (csvaeLoss, aux_y_loss, aux_c_loss, diagnostics).
    """
    bx, bw_, bz, bhw, bhz, byw, byz, bc_coef = (float(v) for v in coeffs)
    B, dz = z.shape
    dw = w.shape[1]
    f32 = jnp.float32
    lanes = 128

    # ---- batch tiling: batch -> (sublane, lane) = (tb//128, 128) -------------
    desired = max(int(block_rows), lanes)
    n_tiles = max(1, -(-B // desired))
    if n_tiles == 1 and B >= 4096:
        n_tiles = 2                    # keep grid >= 2 so v7x uses both TCs
    per = -(-B // n_tiles)
    if n_tiles == 1:
        tb = _round_up(per, lanes)     # block == full array dims
    else:
        tb = _round_up(per, 8 * lanes)  # sublane rows multiple of 8
    Bp = tb * n_tiles
    R = Bp // lanes
    r_tb = tb // lanes

    def prep_cols(a):                  # (B, D) -> (D, R, 128)
        a = a.astype(f32).T
        a = jnp.pad(a, ((0, 0), (0, Bp - B)))
        return a.reshape(a.shape[0], R, lanes)

    def prep_vec(v):                   # (B,) -> (R, 128)
        v = v.reshape(B).astype(f32)
        v = jnp.pad(v, (0, Bp - B))
        return v.reshape(R, lanes)

    z3 = prep_cols(z)
    w3 = prep_cols(w)
    y3 = prep_vec(y)
    c3 = prep_vec(c)
    # axis=0 stack is a contiguous (already lane-dense) concat: (6, Bp).
    lp = jnp.stack([log_px, log_pw, log_pz, log_qw, log_qz, log_qyw],
                   axis=0).astype(f32)
    lp = jnp.pad(lp, ((0, 0), (0, Bp - B))).reshape(6, R, lanes)

    aux_y_w = aux_y_w.astype(f32)      # (n_cls, dz+1) -- PyTorch layout
    aux_y_b = aux_y_b.astype(f32)      # (n_cls,)
    aux_c_w = aux_c_w.astype(f32)      # (1, dw+1)
    aux_c_b = aux_c_b.astype(f32)      # (1,)

    smem = pl.BlockSpec(memory_space=pltpu.MemorySpace.SMEM)
    in_specs = [
        pl.BlockSpec((dz, r_tb, lanes), lambda i: (0, i, 0)),
        pl.BlockSpec((dw, r_tb, lanes), lambda i: (0, i, 0)),
        pl.BlockSpec((r_tb, lanes), lambda i: (i, 0)),
        pl.BlockSpec((r_tb, lanes), lambda i: (i, 0)),
        pl.BlockSpec((6, r_tb, lanes), lambda i: (0, i, 0)),
        smem, smem, smem, smem,
    ]
    out_spec = pl.BlockSpec((3, r_tb, lanes), lambda i: (0, i, 0))
    out_sds = jax.ShapeDtypeStruct((3, R, lanes), f32)

    kernel = functools.partial(_vi_kernel, bx, bw_, bz, bhw, bhz, byw)
    out = pl.pallas_call(
        kernel,
        out_shape=out_sds,
        grid_spec=pltpu.PrefetchScalarGridSpec(
            num_scalar_prefetch=0,
            grid=(n_tiles,),
            in_specs=in_specs,
            out_specs=out_spec,
        ),
        compiler_params=pltpu.CompilerParams(
            dimension_semantics=("parallel",),
            vmem_limit_bytes=32 * 1024 * 1024),
    )(z3, w3, y3, c3, lp, aux_y_w, aux_y_b, aux_c_w, aux_c_b)

    packed = out.reshape(3, Bp)[:, :B]
    m, log_qyz, log_qc = packed[0], packed[1], packed[2]

    # Cheap diagnostics recomputed wrapper-side (fuses into the consumer).
    log_px = log_px.astype(f32)
    log_qyw = log_qyw.astype(f32)
    kl_w = (log_qw - log_pw).astype(f32)
    kl_z = (log_qz - log_pz).astype(f32)
    m1 = -bx * log_px + bw_ * kl_w + bz * kl_z - byw * log_qyw

    csvae_loss = jnp.mean(m)
    # torch recomputes the aux heads on detached inputs; forward values are
    # identical, so reuse the fused kernel's log-probs.
    aux_y_loss = -jnp.mean(byz * log_qyz)
    aux_c_loss = -jnp.mean(bc_coef * log_qc)
    diagnostics = {
        'm1': m1,
        'log_px': log_px,
        'kl_w': kl_w,
        'kl_z': kl_z,
        'qy': jnp.exp(log_qyz),
        'qc': jnp.exp(log_qc),
        'm': m,
        'log_qy': log_qyw,
    }
    return csvae_loss, aux_y_loss, aux_c_loss, diagnostics


def _init_linear(key, out_features, in_features):
    # nn.Linear default init: U(-1/sqrt(fan_in), 1/sqrt(fan_in))
    k_w, k_b = jax.random.split(key)
    bound = 1.0 / (in_features ** 0.5)
    weight = jax.random.uniform(k_w, (out_features, in_features), jnp.float32,
                                minval=-bound, maxval=bound)
    bias = jax.random.uniform(k_b, (out_features,), jnp.float32,
                              minval=-bound, maxval=bound)
    return weight, bias


if __name__ == "__main__":
    key = jax.random.PRNGKey(0)
    ks = jax.random.split(key, 12)

    B, z_dim, w_dim, n_cls = 64, 2, 2, 2
    z = jax.random.normal(ks[0], (B, z_dim), jnp.float32)
    w = jax.random.normal(ks[1], (B, w_dim), jnp.float32)
    y = jax.random.bernoulli(ks[2], 0.5, (B,)).astype(jnp.float32)   # labels {0,1}
    c = jax.random.bernoulli(ks[3], 0.5, (B,)).astype(jnp.float32)   # attribute {0,1}

    # Reduced per-example log-probs from the (untranslatable) model(x, y).
    log_px = -jnp.abs(jax.random.normal(ks[4], (B,), jnp.float32)) * 50.0
    log_pw = -jnp.abs(jax.random.normal(ks[5], (B,), jnp.float32)) * 3.0
    log_pz = -jnp.abs(jax.random.normal(ks[6], (B,), jnp.float32)) * 3.0
    log_qw = -jnp.abs(jax.random.normal(ks[7], (B,), jnp.float32)) * 3.0
    log_qz = -jnp.abs(jax.random.normal(ks[8], (B,), jnp.float32)) * 3.0
    log_qyw = -jnp.abs(jax.random.normal(ks[9], (B,), jnp.float32))

    aux_y_w, aux_y_b = _init_linear(ks[10], n_cls, z_dim + 1)   # head on zc=[z,c]
    aux_c_w, aux_c_b = _init_linear(ks[11], 1, w_dim + 1)       # head on wy=[w,y]

    coeffs = (1.0, 0.2, 0.3, 5.0, 5.0, 1.0, 1.0, 1.0)  # bx bw bz bhw bhz byw byz bc

    csvae_loss, aux_y_loss, aux_c_loss, diag = vi_adv_cond_info_forward(
        z, w, y, c, log_px, log_pw, log_pz, log_qw, log_qz, log_qyw,
        aux_y_w, aux_y_b, aux_c_w, aux_c_b, coeffs=coeffs)
    csvae_loss = jax.block_until_ready(csvae_loss)

    # ---- pure-JAX reference --------------------------------------------------
    bx, bw_, bz, bhw, bhz, byw, byz, bc_coef = coeffs
    zc = jnp.concatenate([z, c[:, None]], axis=1)
    wy = jnp.concatenate([w, y[:, None]], axis=1)
    logits_y = zc @ aux_y_w.T + aux_y_b
    lse = jax.nn.logsumexp(logits_y, axis=1)
    chosen = jnp.take_along_axis(logits_y, y.astype(jnp.int32)[:, None], axis=1)[:, 0]
    log_qyz_ref = chosen - lse
    logit_c = (wy @ aux_c_w.T + aux_c_b)[:, 0]
    log_qc_ref = c * logit_c - jax.nn.softplus(logit_c)
    kl_w_ref = log_qw - log_pw
    kl_z_ref = log_qz - log_pz
    m1_ref = -bx * log_px + bw_ * kl_w_ref + bz * kl_z_ref - byw * log_qyw
    m_ref = m1_ref + bhz * log_qyz_ref + bhw * log_qc_ref

    assert jnp.allclose(csvae_loss, m_ref.mean(), atol=1e-4, rtol=1e-4)
    assert jnp.allclose(aux_y_loss, -(byz * log_qyz_ref).mean(), atol=1e-4, rtol=1e-4)
    assert jnp.allclose(aux_c_loss, -(bc_coef * log_qc_ref).mean(), atol=1e-4, rtol=1e-4)
    assert jnp.allclose(diag['m'], m_ref, atol=1e-4, rtol=1e-4)
    assert jnp.allclose(diag['m1'], m1_ref, atol=1e-4, rtol=1e-4)
    assert jnp.allclose(diag['kl_w'], kl_w_ref, atol=1e-4, rtol=1e-4)
    assert jnp.allclose(diag['kl_z'], kl_z_ref, atol=1e-4, rtol=1e-4)
    assert jnp.allclose(diag['qy'], jnp.exp(log_qyz_ref), atol=1e-4, rtol=1e-4)
    assert jnp.allclose(diag['qc'], jnp.exp(log_qc_ref), atol=1e-4, rtol=1e-4)

    print("KERNEL_OK")
</pallas_src>

<mosaic_0001>
module attributes {stable_mosaic.version = 11 : i64} {
  func.func @_vi_kernel(%arg0: i32, %arg1: memref<2x1x128xf32, #tpu.memory_space<vmem>>, %arg2: memref<2x1x128xf32, #tpu.memory_space<vmem>>, %arg3: memref<1x128xf32, #tpu.memory_space<vmem>>, %arg4: memref<1x128xf32, #tpu.memory_space<vmem>>, %arg5: memref<6x1x128xf32, #tpu.memory_space<vmem>>, %arg6: memref<2x3xf32, #tpu.memory_space<smem>>, %arg7: memref<2xf32, #tpu.memory_space<smem>>, %arg8: memref<1x3xf32, #tpu.memory_space<smem>>, %arg9: memref<1xf32, #tpu.memory_space<smem>>, %arg10: memref<3x1x128xf32, #tpu.memory_space<vmem>>) attributes {dimension_semantics = [#tpu.dimension_semantics<parallel>], iteration_bounds = array<i64: 1>, scalar_prefetch = 0 : i64, scratch_operands = 0 : i64, tpu.core_type = #tpu.core_type<tc>, window_params = [{transform_indices = @transform_0, window_bounds = array<i64: 2, 1, 128>}, {transform_indices = @transform_1, window_bounds = array<i64: 2, 1, 128>}, {transform_indices = @transform_2, window_bounds = array<i64: 1, 128>}, {transform_indices = @transform_3, window_bounds = array<i64: 1, 128>}, {transform_indices = @transform_4, window_bounds = array<i64: 6, 1, 128>}, {transform_indices = @transform_5, window_bounds = array<i64: 2, 3>}, {transform_indices = @transform_6, window_bounds = array<i64: 2>}, {transform_indices = @transform_7, window_bounds = array<i64: 1, 3>}, {transform_indices = @transform_8, window_bounds = array<i64: 1>}, {transform_indices = @transform_9, window_bounds = array<i64: 3, 1, 128>}]} {
    %c0 = arith.constant 0 : index
    %c0_0 = arith.constant 0 : index
    %0 = vector.load %arg3[%c0, %c0_0] : memref<1x128xf32, #tpu.memory_space<vmem>>, vector<1x128xf32>
    %c0_1 = arith.constant 0 : index
    %c0_2 = arith.constant 0 : index
    %1 = vector.load %arg4[%c0_1, %c0_2] : memref<1x128xf32, #tpu.memory_space<vmem>>, vector<1x128xf32>
    %c0_3 = arith.constant 0 : index
    %c0_4 = arith.constant 0 : index
    %c0_5 = arith.constant 0 : index
    %2 = vector.load %arg5[%c0_3, %c0_4, %c0_5] : memref<6x1x128xf32, #tpu.memory_space<vmem>>, vector<1x1x128xf32>
    %3 = vector.shape_cast %2 : vector<1x1x128xf32> to vector<1x128xf32>
    %c1 = arith.constant 1 : index
    %c0_6 = arith.constant 0 : index
    %c0_7 = arith.constant 0 : index
    %4 = vector.load %arg5[%c1, %c0_6, %c0_7] : memref<6x1x128xf32, #tpu.memory_space<vmem>>, vector<1x1x128xf32>
    %5 = vector.shape_cast %4 : vector<1x1x128xf32> to vector<1x128xf32>
    %c2 = arith.constant 2 : index
    %c0_8 = arith.constant 0 : index
    %c0_9 = arith.constant 0 : index
    %6 = vector.load %arg5[%c2, %c0_8, %c0_9] : memref<6x1x128xf32, #tpu.memory_space<vmem>>, vector<1x1x128xf32>
    %7 = vector.shape_cast %6 : vector<1x1x128xf32> to vector<1x128xf32>
    %c3 = arith.constant 3 : index
    %c0_10 = arith.constant 0 : index
    %c0_11 = arith.constant 0 : index
    %8 = vector.load %arg5[%c3, %c0_10, %c0_11] : memref<6x1x128xf32, #tpu.memory_space<vmem>>, vector<1x1x128xf32>
    %9 = vector.shape_cast %8 : vector<1x1x128xf32> to vector<1x128xf32>
    %c4 = arith.constant 4 : index
    %c0_12 = arith.constant 0 : index
    %c0_13 = arith.constant 0 : index
    %10 = vector.load %arg5[%c4, %c0_12, %c0_13] : memref<6x1x128xf32, #tpu.memory_space<vmem>>, vector<1x1x128xf32>
    %11 = vector.shape_cast %10 : vector<1x1x128xf32> to vector<1x128xf32>
    %c5 = arith.constant 5 : index
    %c0_14 = arith.constant 0 : index
    %c0_15 = arith.constant 0 : index
    %12 = vector.load %arg5[%c5, %c0_14, %c0_15] : memref<6x1x128xf32, #tpu.memory_space<vmem>>, vector<1x1x128xf32>
    %13 = vector.shape_cast %12 : vector<1x1x128xf32> to vector<1x128xf32>
    %c0_16 = arith.constant 0 : index
    %c0_17 = arith.constant 0 : index
    %14 = memref.load %arg6[%c0_16, %c0_17] : memref<2x3xf32, #tpu.memory_space<smem>>
    %c0_18 = arith.constant 0 : index
    %c1_19 = arith.constant 1 : index
    %15 = memref.load %arg6[%c0_18, %c1_19] : memref<2x3xf32, #tpu.memory_space<smem>>
    %c0_20 = arith.constant 0 : index
    %c2_21 = arith.constant 2 : index
    %16 = memref.load %arg6[%c0_20, %c2_21] : memref<2x3xf32, #tpu.memory_space<smem>>
    %c1_22 = arith.constant 1 : index
    %c0_23 = arith.constant 0 : index
    %17 = memref.load %arg6[%c1_22, %c0_23] : memref<2x3xf32, #tpu.memory_space<smem>>
    %c1_24 = arith.constant 1 : index
    %c1_25 = arith.constant 1 : index
    %18 = memref.load %arg6[%c1_24, %c1_25] : memref<2x3xf32, #tpu.memory_space<smem>>
    %c1_26 = arith.constant 1 : index
    %c2_27 = arith.constant 2 : index
    %19 = memref.load %arg6[%c1_26, %c2_27] : memref<2x3xf32, #tpu.memory_space<smem>>
    %c0_28 = arith.constant 0 : index
    %20 = memref.load %arg7[%c0_28] : memref<2xf32, #tpu.memory_space<smem>>
    %c1_29 = arith.constant 1 : index
    %21 = memref.load %arg7[%c1_29] : memref<2xf32, #tpu.memory_space<smem>>
    %c0_30 = arith.constant 0 : index
    %c0_31 = arith.constant 0 : index
    %22 = memref.load %arg8[%c0_30, %c0_31] : memref<1x3xf32, #tpu.memory_space<smem>>
    %c0_32 = arith.constant 0 : index
    %c1_33 = arith.constant 1 : index
    %23 = memref.load %arg8[%c0_32, %c1_33] : memref<1x3xf32, #tpu.memory_space<smem>>
    %c0_34 = arith.constant 0 : index
    %c2_35 = arith.constant 2 : index
    %24 = memref.load %arg8[%c0_34, %c2_35] : memref<1x3xf32, #tpu.memory_space<smem>>
    %c0_36 = arith.constant 0 : index
    %25 = memref.load %arg9[%c0_36] : memref<1xf32, #tpu.memory_space<smem>>
    %c0_37 = arith.constant 0 : index
    %c0_38 = arith.constant 0 : index
    %c0_39 = arith.constant 0 : index
    %26 = vector.load %arg1[%c0_37, %c0_38, %c0_39] : memref<2x1x128xf32, #tpu.memory_space<vmem>>, vector<1x1x128xf32>
    %27 = vector.shape_cast %26 : vector<1x1x128xf32> to vector<1x128xf32>
    %c1_40 = arith.constant 1 : index
    %c0_41 = arith.constant 0 : index
    %c0_42 = arith.constant 0 : index
    %28 = vector.load %arg1[%c1_40, %c0_41, %c0_42] : memref<2x1x128xf32, #tpu.memory_space<vmem>>, vector<1x1x128xf32>
    %29 = vector.shape_cast %28 : vector<1x1x128xf32> to vector<1x128xf32>
    %c0_43 = arith.constant 0 : index
    %c0_44 = arith.constant 0 : index
    %c0_45 = arith.constant 0 : index
    %30 = vector.load %arg2[%c0_43, %c0_44, %c0_45] : memref<2x1x128xf32, #tpu.memory_space<vmem>>, vector<1x1x128xf32>
    %31 = vector.shape_cast %30 : vector<1x1x128xf32> to vector<1x128xf32>
    %c1_46 = arith.constant 1 : index
    %c0_47 = arith.constant 0 : index
    %c0_48 = arith.constant 0 : index
    %32 = vector.load %arg2[%c1_46, %c0_47, %c0_48] : memref<2x1x128xf32, #tpu.memory_space<vmem>>, vector<1x1x128xf32>
    %33 = vector.shape_cast %32 : vector<1x1x128xf32> to vector<1x128xf32>
    %34 = vector.broadcast %16 : f32 to vector<1x128xf32>
    %35 = arith.mulf %1, %34 : vector<1x128xf32>
    %36 = vector.broadcast %20 : f32 to vector<1x128xf32>
    %37 = arith.addf %35, %36 : vector<1x128xf32>
    %38 = vector.broadcast %14 : f32 to vector<1x128xf32>
    %39 = arith.mulf %27, %38 : vector<1x128xf32>
    %40 = arith.addf %37, %39 : vector<1x128xf32>
    %41 = vector.broadcast %15 : f32 to vector<1x128xf32>
    %42 = arith.mulf %29, %41 : vector<1x128xf32>
    %43 = arith.addf %40, %42 : vector<1x128xf32>
    %44 = vector.broadcast %19 : f32 to vector<1x128xf32>
    %45 = arith.mulf %1, %44 : vector<1x128xf32>
    %46 = vector.broadcast %21 : f32 to vector<1x128xf32>
    %47 = arith.addf %45, %46 : vector<1x128xf32>
    %48 = vector.broadcast %17 : f32 to vector<1x128xf32>
    %49 = arith.mulf %27, %48 : vector<1x128xf32>
    %50 = arith.addf %47, %49 : vector<1x128xf32>
    %51 = vector.broadcast %18 : f32 to vector<1x128xf32>
    %52 = arith.mulf %29, %51 : vector<1x128xf32>
    %53 = arith.addf %50, %52 : vector<1x128xf32>
    %54 = arith.maximumf %43, %53 : vector<1x128xf32>
    %55 = arith.subf %43, %54 : vector<1x128xf32>
    %56 = math.exp %55 : vector<1x128xf32>
    %57 = arith.subf %53, %54 : vector<1x128xf32>
    %58 = math.exp %57 : vector<1x128xf32>
    %59 = arith.addf %56, %58 : vector<1x128xf32>
    %60 = math.log %59 : vector<1x128xf32>
    %61 = arith.addf %54, %60 : vector<1x128xf32>
    %cst = arith.constant 0.000000e+00 : f32
    %62 = vector.broadcast %cst : f32 to vector<1x128xf32>
    %cst_49 = arith.constant 0.000000e+00 : f32
    %63 = vector.broadcast %cst_49 : f32 to vector<1x128xf32>
    %64 = arith.subf %0, %63 : vector<1x128xf32>
    %65 = math.absf %64 : vector<1x128xf32>
    %cst_50 = arith.constant 5.000000e-01 : f32
    %66 = vector.broadcast %cst_50 : f32 to vector<1x128xf32>
    %67 = arith.cmpf olt, %65, %66 : vector<1x128xf32>
    %cst_51 = arith.constant 0.000000e+00 : f32
    %68 = vector.broadcast %cst_51 : f32 to vector<1x128xf32>
    %69 = arith.select %67, %43, %68 : vector<1x128xi1>, vector<1x128xf32>
    %70 = arith.addf %62, %69 : vector<1x128xf32>
    %cst_52 = arith.constant 1.000000e+00 : f32
    %71 = vector.broadcast %cst_52 : f32 to vector<1x128xf32>
    %72 = arith.subf %0, %71 : vector<1x128xf32>
    %73 = math.absf %72 : vector<1x128xf32>
    %cst_53 = arith.constant 5.000000e-01 : f32
    %74 = vector.broadcast %cst_53 : f32 to vector<1x128xf32>
    %75 = arith.cmpf olt, %73, %74 : vector<1x128xf32>
    %cst_54 = arith.constant 0.000000e+00 : f32
    %76 = vector.broadcast %cst_54 : f32 to vector<1x128xf32>
    %77 = arith.select %75, %53, %76 : vector<1x128xi1>, vector<1x128xf32>
    %78 = arith.addf %70, %77 : vector<1x128xf32>
    %79 = arith.subf %78, %61 : vector<1x128xf32>
    %80 = vector.broadcast %24 : f32 to vector<1x128xf32>
    %81 = arith.mulf %0, %80 : vector<1x128xf32>
    %82 = vector.broadcast %25 : f32 to vector<1x128xf32>
    %83 = arith.addf %81, %82 : vector<1x128xf32>
    %84 = vector.broadcast %22 : f32 to vector<1x128xf32>
    %85 = arith.mulf %31, %84 : vector<1x128xf32>
    %86 = arith.addf %83, %85 : vector<1x128xf32>
    %87 = vector.broadcast %23 : f32 to vector<1x128xf32>
    %88 = arith.mulf %33, %87 : vector<1x128xf32>
    %89 = arith.addf %86, %88 : vector<1x128xf32>
    %cst_55 = arith.constant 0.000000e+00 : f32
    %90 = vector.broadcast %cst_55 : f32 to vector<1x128xf32>
    %91 = arith.maximumf %89, %90 : vector<1x128xf32>
    %92 = math.absf %89 : vector<1x128xf32>
    %cst_56 = arith.constant 0.000000e+00 : f32
    %93 = vector.broadcast %cst_56 : f32 to vector<1x128xf32>
    %94 = arith.subf %93, %92 : vector<1x128xf32>
    %95 = math.exp %94 : vector<1x128xf32>
    %96 = math.log1p %95 : vector<1x128xf32>
    %97 = arith.addf %91, %96 : vector<1x128xf32>
    %98 = arith.mulf %1, %89 : vector<1x128xf32>
    %99 = arith.subf %98, %97 : vector<1x128xf32>
    %cst_57 = arith.constant -1.000000e+00 : f32
    %100 = vector.broadcast %cst_57 : f32 to vector<1x128xf32>
    %101 = arith.mulf %100, %3 : vector<1x128xf32>
    %102 = arith.subf %9, %5 : vector<1x128xf32>
    %cst_58 = arith.constant 2.000000e-01 : f32
    %103 = vector.broadcast %cst_58 : f32 to vector<1x128xf32>
    %104 = arith.mulf %103, %102 : vector<1x128xf32>
    %105 = arith.addf %101, %104 : vector<1x128xf32>
    %106 = arith.subf %11, %7 : vector<1x128xf32>
    %cst_59 = arith.constant 3.000000e-01 : f32
    %107 = vector.broadcast %cst_59 : f32 to vector<1x128xf32>
    %108 = arith.mulf %107, %106 : vector<1x128xf32>
    %109 = arith.addf %105, %108 : vector<1x128xf32>
    %cst_60 = arith.constant 1.000000e+00 : f32
    %110 = vector.broadcast %cst_60 : f32 to vector<1x128xf32>
    %111 = arith.mulf %110, %13 : vector<1x128xf32>
    %112 = arith.subf %109, %111 : vector<1x128xf32>
    %cst_61 = arith.constant 5.000000e+00 : f32
    %113 = vector.broadcast %cst_61 : f32 to vector<1x128xf32>
    %114 = arith.mulf %113, %79 : vector<1x128xf32>
    %115 = arith.addf %112, %114 : vector<1x128xf32>
    %cst_62 = arith.constant 5.000000e+00 : f32
    %116 = vector.broadcast %cst_62 : f32 to vector<1x128xf32>
    %117 = arith.mulf %116, %99 : vector<1x128xf32>
    %118 = arith.addf %115, %117 : vector<1x128xf32>
    %c0_63 = arith.constant 0 : index
    %c0_64 = arith.constant 0 : index
    %c0_65 = arith.constant 0 : index
    %119 = vector.load %arg10[%c0_63, %c0_64, %c0_65] : memref<3x1x128xf32, #tpu.memory_space<vmem>>, vector<1x1x128xf32>
    %120 = vector.shape_cast %119 : vector<1x1x128xf32> to vector<1x128xf32>
    %121 = vector.shape_cast %118 : vector<1x128xf32> to vector<1x1x128xf32>
    tpu.vector_store %arg10[%c0_63, %c0_64, %c0_65], %121 {strides = array<i32>} : memref<3x1x128xf32, #tpu.memory_space<vmem>>, vector<1x1x128xf32>,
    %c1_66 = arith.constant 1 : index
    %c0_67 = arith.constant 0 : index
    %c0_68 = arith.constant 0 : index
    %122 = vector.load %arg10[%c1_66, %c0_67, %c0_68] : memref<3x1x128xf32, #tpu.memory_space<vmem>>, vector<1x1x128xf32>
    %123 = vector.shape_cast %122 : vector<1x1x128xf32> to vector<1x128xf32>
    %124 = vector.shape_cast %79 : vector<1x128xf32> to vector<1x1x128xf32>
    tpu.vector_store %arg10[%c1_66, %c0_67, %c0_68], %124 {strides = array<i32>} : memref<3x1x128xf32, #tpu.memory_space<vmem>>, vector<1x1x128xf32>,
    %c2_69 = arith.constant 2 : index
    %c0_70 = arith.constant 0 : index
    %c0_71 = arith.constant 0 : index
    %125 = vector.load %arg10[%c2_69, %c0_70, %c0_71] : memref<3x1x128xf32, #tpu.memory_space<vmem>>, vector<1x1x128xf32>
    %126 = vector.shape_cast %125 : vector<1x1x128xf32> to vector<1x128xf32>
    %127 = vector.shape_cast %99 : vector<1x128xf32> to vector<1x1x128xf32>
    tpu.vector_store %arg10[%c2_69, %c0_70, %c0_71], %127 {strides = array<i32>} : memref<3x1x128xf32, #tpu.memory_space<vmem>>, vector<1x1x128xf32>,
    return
  }
  func.func @transform_0(%arg0: i32) -> (i32, i32, i32) {
    %c0_i32 = arith.constant 0 : i32
    %c0_i32_0 = arith.constant 0 : i32
    %c0_i32_1 = arith.constant 0 : i32
    return %c0_i32, %arg0, %c0_i32_0 : i32, i32, i32
  }
  func.func @transform_1(%arg0: i32) -> (i32, i32, i32) {
    %c0_i32 = arith.constant 0 : i32
    %c0_i32_0 = arith.constant 0 : i32
    %c0_i32_1 = arith.constant 0 : i32
    return %c0_i32, %arg0, %c0_i32_0 : i32, i32, i32
  }
  func.func @transform_2(%arg0: i32) -> (i32, i32) {
    %c0_i32 = arith.constant 0 : i32
    %c0_i32_0 = arith.constant 0 : i32
    return %arg0, %c0_i32 : i32, i32
  }
  func.func @transform_3(%arg0: i32) -> (i32, i32) {
    %c0_i32 = arith.constant 0 : i32
    %c0_i32_0 = arith.constant 0 : i32
    return %arg0, %c0_i32 : i32, i32
  }
  func.func @transform_4(%arg0: i32) -> (i32, i32, i32) {
    %c0_i32 = arith.constant 0 : i32
    %c0_i32_0 = arith.constant 0 : i32
    %c0_i32_1 = arith.constant 0 : i32
    return %c0_i32, %arg0, %c0_i32_0 : i32, i32, i32
  }
  func.func @transform_5(%arg0: i32) -> (i32, i32) {
    %c0_i32 = arith.constant 0 : i32
    %c0_i32_0 = arith.constant 0 : i32
    %c0_i32_1 = arith.constant 0 : i32
    return %c0_i32, %c0_i32_0 : i32, i32
  }
  func.func @transform_6(%arg0: i32) -> i32 {
    %c0_i32 = arith.constant 0 : i32
    %c0_i32_0 = arith.constant 0 : i32
    return %c0_i32 : i32
  }
  func.func @transform_7(%arg0: i32) -> (i32, i32) {
    %c0_i32 = arith.constant 0 : i32
    %c0_i32_0 = arith.constant 0 : i32
    %c0_i32_1 = arith.constant 0 : i32
    return %c0_i32, %c0_i32_0 : i32, i32
  }
  func.func @transform_8(%arg0: i32) -> i32 {
    %c0_i32 = arith.constant 0 : i32
    %c0_i32_0 = arith.constant 0 : i32
    return %c0_i32 : i32
  }
  func.func @transform_9(%arg0: i32) -> (i32, i32, i32) {
    %c0_i32 = arith.constant 0 : i32
    %c0_i32_0 = arith.constant 0 : i32
    %c0_i32_1 = arith.constant 0 : i32
    return %c0_i32, %arg0, %c0_i32_0 : i32, i32, i32
  }
}

</mosaic_0001>

<bundles_post_ra>
// kernel: vi_adv_cond_info_forward.1
= control target key start
LH: loop header
LB: loop body
LE: loop exit
PB: predicated region body
PF: predicated region fallthrough
CT: control target
= control target key end

     0   :  { %15 = vsyncpa [#allocation4], 0  ;;  %s383_s0 = inlined_call_operand.vmem [shape: f32[2,1,128], index: 0, kind: input, shape index: {}]   ;;  %s384_s1 = inlined_call_operand.vmem [shape: f32[2,1,128], index: 1, kind: input, shape index: {}]   ;;  %s385_s2 = inlined_call_operand.vmem [shape: f32[1,128], index: 2, kind: input, shape index: {}]   ;;  %s386_s3 = inlined_call_operand.vmem [shape: f32[1,128], index: 3, kind: input, shape index: {}]   ;;  %s387_s4 = inlined_call_operand.vmem [shape: f32[6,1,128], index: 4, kind: input, shape index: {}]   ;;  %s388_s5 = inlined_call_operand.vmem [shape: f32[2,3], index: 5, kind: input, shape index: {}]   ;;  %s389_s6 = inlined_call_operand.vmem [shape: f32[2], index: 6, kind: input, shape index: {}]   ;;  %s390_s7 = inlined_call_operand.vmem [shape: f32[1,3], index: 7, kind: input, shape index: {}]   ;;  %s391_s8 = inlined_call_operand.<no memory space> [shape: f32[1], index: 8, kind: input, shape index: {}]   ;;  %s392_s9 = inlined_call_operand.vmem [shape: f32[3,1,128], index: 9, kind: output, shape index: {}]  }
   0x1   :  { %16 = vsyncpa [#allocation6], 0  ;;  %s43_s11 = sshll.u32 %s389_s6, 4  ;;  %s33_s14 = sshll.u32 %s388_s5, 4  ;;  %s44_s11 = int_to_ptr.vmem [resolvable:$true] %s43_s11  ;;  %s34_s14 = int_to_ptr.vmem [resolvable:$true] %s33_s14 }
   0x2   :  { %s222_s15 = scalar_lea.vmem %s44_s11, 16  ;;  %p227_p1 = scmp.lt.s32.totalorder %s44_s11, %s44_s11 }
   0x3   :  { %p223_p0 = scmp.ne.s32.totalorder %s44_s11, %s222_s15  ;;  %p228_p2 = scmp.lt.s32.totalorder %s222_s15, %s222_s15 }
   0x5   :  { %p229_p3 = por %p228_p2, %p227_p1 }
   0x7   :  { %p230_p4 = pnand %p229_p3, %p223_p0 }
   0x9   :  { %233 = shalt.err (!%p230_p4)
}
   0xa   :  { %s262_s16 = smov [#allocation5]   ;;  %s234_s17 = scalar_lea.vmem %s34_s14, 32 }
   0xb   :  { %46 = dma.vmem_to_smem %s44_s11, 16, %s262_s16, [#allocation6]  }
   0xc   :  { %p235_p5 = scmp.ne.s32.totalorder %s34_s14, %s234_s17  ;;  %p239_p6 = scmp.lt.s32.totalorder %s34_s14, %s34_s14 }
   0xd   :  { %p240_p7 = scmp.lt.s32.totalorder %s234_s17, %s234_s17 }
   0xf   :  { %p241_p8 = por %p240_p7, %p239_p6 }
  0x11   :  { %p242_p9 = pnand %p241_p8, %p235_p5 }
  0x13   :  { %245 = shalt.err (!%p242_p9)
}
  0x14   :  { %s263_s6 = smov [#allocation3]   ;;  %s53_s19 = sshll.u32 %s390_s7, 4  ;;  %s54_s19 = int_to_ptr.vmem [resolvable:$true] %s53_s19 }
  0x15   :  { %36 = dma.vmem_to_smem %s34_s14, 32, %s263_s6, [#allocation4]  }
  0x16   :  { %s246_s20 = scalar_lea.vmem %s54_s19, 16  ;;  %p251_p11 = scmp.lt.s32.totalorder %s54_s19, %s54_s19 }
  0x17   :  { %p247_p10 = scmp.ne.s32.totalorder %s54_s19, %s246_s20  ;;  %p252_p12 = scmp.lt.s32.totalorder %s246_s20, %s246_s20 }
  0x19   :  { %p253_p13 = por %p252_p12, %p251_p11 }
  0x1b   :  { %p254_p0 = pnand %p253_p13, %p247_p10 }
  0x1d   :  { %257 = shalt.err (!%p254_p0)
}
  0x1e   :  { %s264_s21 = smov [#allocation7]  }
  0x1f   :  { %56 = dma.vmem_to_smem %s54_s19, 16, %s264_s21, [#allocation6]  }
  0x20   :  { %258 = dma.done.wait [#allocation4], 32  }
  0x21   :  { %259 = vsyncadd [#allocation4], 4294967264 }
  0x22   :  { %260 = dma.done.wait [#allocation6], 32  }
  0x23   :  { %261 = vsyncadd [#allocation6], 4294967264 }
  0x24   :  { %68 = sfence }
  0x25   :  { %s82_s22 = sld [smem:[#allocation3]]  ;;  %s196_s23 = sld [smem:[#allocation3 + $0x1]]  ;;  %v329_v0 = vld [vmem:[%s386_s3] sm:$0x1]  ;;  %v204_v2 = vld [vmem:[%s383_s0 + $0x1] sm:$0x1]  ;;  %v143_v9 = vstv %s391_s8 }
  0x26   :  { %s197_s24 = sld [smem:[#allocation3 + $0x2]]  ;;  %s198_s25 = sld [smem:[#allocation3 + $0x80]]  ;;  %v94_v1 = vld [vmem:[%s383_s0] sm:$0x1]  ;;  %v205_v20 = vld [vmem:[%s384_s1 + $0x1] sm:$0x1] }
  0x27   :  { %s324_s7 = sld [smem:[#allocation3 + $0x81]]  ;;  %s200_s26 = sld [smem:[#allocation3 + $0x82]]  ;;  %v69_v10 = vld [vmem:[%s385_s2] sm:$0x1]  ;;  %v191_v44 = vld [vmem:[%s387_s4 + $0x1] sm:$0x1] }
  0x28   :  { %s88_s27 = sld [smem:[#allocation5]]  ;;  %s201_s30 = sld [smem:[#allocation5 + $0x1]]  ;;  %v97_v15 = vld [vmem:[%s384_s1] sm:$0x1]  ;;  %v193_v45 = vld [vmem:[%s387_s4 + $0x3] sm:$0x1] }
  0x29   :  { %s90_s10 = sld [smem:[#allocation7]]  ;;  %s331_s11 = sld [smem:[#allocation7 + $0x1]]  ;;  %v206_v48 = vadd.f32 -1.0, %v69_v10  ;;  %v71_v50 = vld [vmem:[%s387_s4] sm:$0x1]  ;;  %v169_v52 = vsub.f32 %v193_v45, %v191_v44 }
  0x2a   :  { %s203_s12 = sld [smem:[#allocation7 + $0x2]]  ;;  %v192_v53 = vld [vmem:[%s387_s4 + $0x2] sm:$0x1]  ;;  %v194_v54 = vld [vmem:[%s387_s4 + $0x4] sm:$0x1]  ;;  %v168_v59 = vmul.f32 -1.0, %v71_v50 }
  0x2b   :  { %v104_v3 = vstv %s82_s22  ;;  %v107_v5 = vstv %s196_s23  ;;  %v131_v56 = vand.u32 2147483647, %v69_v10  ;;  %v136_v57 = vand.u32 2147483647, %v206_v48 }
  0x2c   :  { %v100_v4 = vstv %s197_s24  ;;  %v105_v7 = vmul.f32 %v104_v3, %v94_v1  ;;  %v114_v8 = vstv %s198_s25  ;;  %v108_v12 = vmul.f32 %v204_v2, %v107_v5 }
  0x2d   :  { %v101_v6 = vmul.f32 %v100_v4, %v329_v0  ;;  %v110_v13 = vstv %s200_s26  ;;  %v117_v14 = vstv %s324_s7  ;;  %v115_v19 = vmul.f32 %v114_v8, %v94_v1 }
  0x2e   :  { %v102_v11 = vstv %s88_s27  ;;  %v111_v17 = vmul.f32 %v110_v13, %v329_v0  ;;  %v112_v18 = vstv %s201_s30  ;;  %v118_v26 = vmul.f32 %v204_v2, %v117_v14 }
  0x2f   :  { %v103_v16 = vadd.f32 %v102_v11, %v101_v6  ;;  %v145_v22 = vstv %s90_s10  ;;  %v148_v23 = vstv %s331_s11  ;;  %v170_v60 = vmul.f32 0.2, %v169_v52 }
  0x30   :  { %v141_v21 = vstv %s203_s12  ;;  %v113_v25 = vadd.f32 %v112_v18, %v111_v17  ;;  %v146_v28 = vmul.f32 %v145_v22, %v97_v15  ;;  %v149_v32 = vmul.f32 %v205_v20, %v148_v23 }
  0x31   :  { %v106_v24 = vadd.f32 %v105_v7, %v103_v16  ;;  %v142_v27 = vmul.f32 %v141_v21, %v69_v10  ;;  %v172_v61 = vsub.f32 %v194_v54, %v192_v53  ;;  %vm132_vm0 = vcmp.lt.f32.partialorder %v131_v56, 0.5 }
  0x32   :  { %v116_v30 = vadd.f32 %v115_v19, %v113_v25  ;;  %vm137_vm1 = vcmp.lt.f32.partialorder %v136_v57, 0.5  ;;  %v171_v63 = vadd.f32 %v170_v60, %v168_v59 }
  0x33   :  { %v109_v29 = vadd.f32 %v108_v12, %v106_v24  ;;  %v144_v31 = vadd.f32 %v143_v9, %v142_v27  ;;  %v173_v1 = vmul.f32 0.3, %v172_v61  ;;  %v195_v12 = vld [vmem:[%s387_s4 + $0x5] sm:$0x1] }
  0x34   :  { %v119_v33 = vadd.f32 %v118_v26, %v116_v30 }
  0x35   :  { %v147_v34 = vadd.f32 %v146_v28, %v144_v31  ;;  %v133_v3 = vsel %vm132_vm0, %v109_v29, 0.0  ;;  %v174_v7 = vadd.f32 %v173_v1, %v171_v63 }
  0x36   :  { %v120_v35 = vmax.f32 %v109_v29, %v119_v33  ;;  %v138_v4 = vsel %vm137_vm1, %v119_v33, 0.0 }
  0x37   :  { %v150_v36 = vadd.f32 %v149_v32, %v147_v34  ;;  %v139_v10 = vadd.f32 %v138_v4, %v133_v3  ;;  %v175_v19 = vsub.f32 %v174_v7, %v195_v12 }
  0x38   :  { %v121_v37 = vsub.f32 %v109_v29, %v120_v35  ;;  %v124_v38 = vsub.f32 %v119_v33, %v120_v35 }
  0x39   :  { %v152_v39 = vand.u32 2147483647, %v150_v36  ;;  %v151_v11 = vmax.f32 %v150_v36, 0.0  ;;  %v166_v15 = vmul.f32 %v150_v36, %v329_v0 }
  0x3a   :  { %v122_v40 = vmul.f32 1.442695, %v121_v37  ;;  %v125_v41 = vmul.f32 1.442695, %v124_v38 }
  0x3b   :  { %v153_v42 = vsub.f32 0.0, %v152_v39 }
  0x3c   :  { %212 = vpow2.f32 %v122_v40 }
  0x3d   :  { %v154_v43 = vmul.f32 1.442695, %v153_v42  ;;  %214 = vpow2.f32 %v125_v41 }
  0x3f   :  { %216 = vpow2.f32 %v154_v43 }
  0x46   :  { %v213_v46 = vpop.eup %212 }
  0x47   :  { %v215_v47 = vpop.eup %214 }
  0x48   :  { %v127_v51 = vadd.f32 %v215_v47, %v213_v46 }
  0x49   :  { %v217_v49 = vpop.eup %216 }
  0x4a   :  { %v156_v55 = vadd.f32 1.0, %v217_v49  ;;  %218 = vlog2.f32 %v127_v51  ;;  %v159_v58 = vmul.f32 -0.5, %v217_v49  ;;  %v162_v2 = vand.u32 2147483647, %v217_v49 }
  0x4c   :  { %220 = vlog2.f32 %v156_v55  ;;  %v160_v62 = vadd.f32 1.0, %v159_v58  ;;  %vm163_vm2 = vcmp.lt.f32.partialorder %v162_v2, 0.0004427343 }
  0x4e   :  { %v161_v6 = vmul.f32 %v217_v49, %v160_v62 }
  0x54   :  { %v219_v5 = vpop.eup %218 }
  0x55   :  { %v129_v9 = vmul.f32 0.6931472, %v219_v5 }
  0x56   :  { %v221_v8 = vpop.eup %220 }
  0x57   :  { %v158_v13 = vmul.f32 0.6931472, %v221_v8  ;;  %v130_v14 = vadd.f32 %v129_v9, %v120_v35 }
  0x59   :  { %v164_v16 = vsel %vm163_vm2, %v161_v6, %v158_v13  ;;  %v140_v17 = vsub.f32 %v139_v10, %v130_v14 }
  0x5a   :  { %v165_v18 = vadd.f32 %v164_v16, %v151_v11 }
  0x5b   :  { %v176_v21 = vmul.f32 5.0, %v140_v17  ;;  %207 = vst [vmem:[%s392_s9 + $0x1] sm:$0x1] %v140_v17 }
  0x5c   :  { %v167_v20 = vsub.f32 %v166_v15, %v165_v18 }
  0x5d   :  { %v177_v22 = vadd.f32 %v176_v21, %v175_v19 }
  0x5e   :  { %v178_v23 = vmul.f32 5.0, %v167_v20  ;;  %208 = vst [vmem:[%s392_s9 + $0x2] sm:$0x1] %v167_v20 }
  0x60   :  { %v179_v24 = vadd.f32 %v178_v23, %v177_v22 }
  0x62   :  { %180 = vst [vmem:[%s392_s9] sm:$0x1] %v179_v24 }
  0x63   :  { %189 = vsyncpa [#allocation4], 1 }
  0x64   :  { %190 = vsyncpa [#allocation6], 1 }

</bundles_post_ra>
